<compile_context>
chip_gen: v5e
topology: v5e:2x2
jax: 0.10.0
libtpu: 0.0.40
codegen_flags: <defaults>
</compile_context>

<pallas_src>
import functools

import jax
import jax.numpy as jnp
from jax.experimental import pallas as pl
from jax.experimental.pallas import tpu as pltpu

HIDDEN = 64        # obs/action embedding width, also FC1/FC2 output width
EMB = 2 * HIDDEN   # 128: concat width == full MXU lane width


def _round_up(x, m):
    return ((x + m - 1) // m) * m


def q_kernel(obs_ref, acts_ref,
             w_obs_ref, w_act_ref, b_emb_ref,
             w1_ref, b1_ref,
             w2_ref, b2_ref,
             w3_row_ref, b3_ref,
             out_ref):
    w_obs = w_obs_ref[...]
    w_act = w_act_ref[...]
    cdt = w_obs.dtype   # compute (MXU) dtype, set at pack time

    # Embedding: each input hits its half of the (zero-padded) block-diagonal
    # projection, so the sum of the two partial products equals
    # concat(obs_FC(obs), action_FC(acts)).  f32 accumulation, f32 biases.
    emb = (jnp.dot(obs_ref[...].astype(cdt), w_obs,
                   preferred_element_type=jnp.float32)
           + jnp.dot(acts_ref[...].astype(cdt), w_act,
                     preferred_element_type=jnp.float32)
           + b_emb_ref[...])

    # FC1 + ReLU   (K = 128 -> full lane width feeding the MXU)
    h1 = (jnp.dot(emb.astype(cdt), w1_ref[...],
                  preferred_element_type=jnp.float32) + b1_ref[...])
    h1 = jnp.maximum(h1, 0.0)

    # FC2 + ReLU
    h2 = (jnp.dot(h1.astype(cdt), w2_ref[...],
                  preferred_element_type=jnp.float32) + b2_ref[...])
    h2 = jnp.maximum(h2, 0.0)

    # FC3 (64 -> 1): an N=1 MXU matmul wastes the array; do it on the VPU/XLU
    # as broadcast-multiply + lane reduction; scalar bias comes from SMEM.
    q = jnp.sum(h2 * w3_row_ref[...], axis=-1, keepdims=True) + b3_ref[0]
    out_ref[...] = q.astype(out_ref.dtype)


def pack_params(params, compute_dtype=jnp.bfloat16):
    """One-time repack of the nn.Linear parameters for the kernel.

    * The two embedding layers become the two row-blocks of a block-diagonal
      (d_obs + d_act, 128) projection, pre-split so obs/acts can be fed as
      separate inputs (no concat in the hot path).
    * Matmul weights are cast to `compute_dtype` (bf16 by default: ~4x MXU
      rate on v6e/v7x, natively supported on v5e); biases, the FC3 row and the
      FC3 scalar bias stay f32.
    """
    w_obs, w_act = params["w_obs"], params["w_act"]
    d_obs, d_act = w_obs.shape[0], w_act.shape[0]

    w_obs_blk = jnp.zeros((d_obs, EMB), jnp.float32).at[:, :HIDDEN].set(w_obs)
    w_act_blk = jnp.zeros((d_act, EMB), jnp.float32).at[:, HIDDEN:].set(w_act)
    b_emb = jnp.concatenate([params["b_obs"], params["b_act"]], axis=-1)

    return dict(
        w_obs_blk=w_obs_blk.astype(compute_dtype),       # (d_obs, 128)
        w_act_blk=w_act_blk.astype(compute_dtype),       # (d_act, 128)
        b_emb=b_emb.astype(jnp.float32),                 # (1, 128)
        w1=params["w1"].astype(compute_dtype),           # (128, 64)
        b1=params["b1"].astype(jnp.float32),             # (1, 64)
        w2=params["w2"].astype(compute_dtype),           # (64, 64)
        b2=params["b2"].astype(jnp.float32),             # (1, 64)
        w3_row=params["w3"].T.astype(jnp.float32),       # (1, 64) — VPU path
        b3=params["b3"].reshape(1).astype(jnp.float32),  # (1,)    — SMEM
    )


@functools.partial(jax.jit, static_argnames=("block_batch",))
def q_forward(obs, acts, packed, *, block_batch=None):
    """Pallas forward pass of the Q network.

    obs:  (B, dim_observation) float32 (or bf16)
    acts: (B, dim_action)      float32 (or bf16)
    returns q: (B, 1) float32
    """
    B, d_obs = obs.shape
    d_act = acts.shape[1]

    # ---- batch tile selection ------------------------------------------
    # Each (tb, d) input block is lane-padded to (tb, 128) in VMEM and
    # double-buffered; cap tb so 2 inputs x 2 buffers stay around 16 MiB.
    in_itemsize = max(obs.dtype.itemsize, acts.dtype.itemsize)
    max_tb = 16384 if in_itemsize <= 2 else 8192
    tb = max_tb if block_batch is None else min(block_batch, max_tb)
    # Keep >= 2 grid steps for large B so ("parallel",) occupies both v7x TCs.
    tb = min(tb, _round_up(pl.cdiv(B, 2), 8))
    tb = max(tb, 8)
    if tb >= B:
        tb = B            # single full-array block (always a legal block shape)
    grid = (pl.cdiv(B, tb),)

    in_specs = [
        pl.BlockSpec((tb, d_obs), lambda i: (i, 0)),                  # obs tile
        pl.BlockSpec((tb, d_act), lambda i: (i, 0)),                  # acts tile
        pl.BlockSpec(packed["w_obs_blk"].shape, lambda i: (0, 0)),    # resident
        pl.BlockSpec(packed["w_act_blk"].shape, lambda i: (0, 0)),
        pl.BlockSpec(packed["b_emb"].shape, lambda i: (0, 0)),
        pl.BlockSpec(packed["w1"].shape, lambda i: (0, 0)),
        pl.BlockSpec(packed["b1"].shape, lambda i: (0, 0)),
        pl.BlockSpec(packed["w2"].shape, lambda i: (0, 0)),
        pl.BlockSpec(packed["b2"].shape, lambda i: (0, 0)),
        pl.BlockSpec(packed["w3_row"].shape, lambda i: (0, 0)),
        pl.BlockSpec(memory_space=pltpu.MemorySpace.SMEM),            # b3 scalar
    ]
    out_spec = pl.BlockSpec((tb, 1), lambda i: (i, 0))

    # Advisory cost estimate: this kernel is overhead/DMA dominated, not
    # FLOP dominated — tell XLA so it does not over-serialize neighbors.
    weight_bytes = sum(
        int(a.size) * a.dtype.itemsize
        for a in (packed["w_obs_blk"], packed["w_act_blk"], packed["b_emb"],
                  packed["w1"], packed["b1"], packed["w2"], packed["b2"],
                  packed["w3_row"], packed["b3"]))
    flops = 2 * B * (d_obs * EMB + d_act * EMB + EMB * HIDDEN
                     + HIDDEN * HIDDEN + HIDDEN)
    bytes_accessed = (B * d_obs * obs.dtype.itemsize
                      + B * d_act * acts.dtype.itemsize
                      + B * 4 + weight_bytes)
    cost = pl.CostEstimate(flops=flops, transcendentals=0,
                           bytes_accessed=int(bytes_accessed))

    return pl.pallas_call(
        q_kernel,
        out_shape=jax.ShapeDtypeStruct((B, 1), jnp.float32),
        grid=grid,
        in_specs=in_specs,
        out_specs=out_spec,
        compiler_params=pltpu.CompilerParams(
            dimension_semantics=("parallel",),        # megacore sharding on v7x
            vmem_limit_bytes=32 * 1024 * 1024),
        cost_estimate=cost,
    )(obs, acts,
      packed["w_obs_blk"], packed["w_act_blk"], packed["b_emb"],
      packed["w1"], packed["b1"],
      packed["w2"], packed["b2"],
      packed["w3_row"], packed["b3"])


def init_params(key, dim_observation, dim_action):
    """Deterministic synthetic init matching the nn.Linear layer shapes.

    Weights stored as (in_features, out_features); biases as (1, out)."""
    ks = jax.random.split(key, 10)

    def lin(kw, kb, fan_in, fan_out):
        bound = 1.0 / jnp.sqrt(fan_in)
        w = jax.random.uniform(kw, (fan_in, fan_out), jnp.float32, -bound, bound)
        b = jax.random.uniform(kb, (1, fan_out), jnp.float32, -bound, bound)
        return w, b

    w_obs, b_obs = lin(ks[0], ks[1], dim_observation, HIDDEN)
    w_act, b_act = lin(ks[2], ks[3], dim_action, HIDDEN)
    w1, b1 = lin(ks[4], ks[5], 2 * HIDDEN, HIDDEN)
    w2, b2 = lin(ks[6], ks[7], HIDDEN, HIDDEN)
    w3, b3 = lin(ks[8], ks[9], HIDDEN, 1)
    return dict(w_obs=w_obs, b_obs=b_obs, w_act=w_act, b_act=b_act,
                w1=w1, b1=b1, w2=w2, b2=b2, w3=w3, b3=b3)


def q_reference(obs, acts, p):
    """Pure-JAX reference mirroring the PyTorch forward."""
    obs_emb = obs @ p["w_obs"] + p["b_obs"]
    act_emb = acts @ p["w_act"] + p["b_act"]
    emb = jnp.concatenate([obs_emb, act_emb], axis=-1)
    h1 = jnp.maximum(emb @ p["w1"] + p["b1"], 0.0)
    h2 = jnp.maximum(h1 @ p["w2"] + p["b2"], 0.0)
    return h2 @ p["w3"] + p["b3"]


if __name__ == "__main__":
    B = 8
    dim_observation = 16
    dim_action = 4

    key = jax.random.PRNGKey(0)
    k_obs, k_act, k_par = jax.random.split(key, 3)
    obs = jax.random.normal(k_obs, (B, dim_observation), jnp.float32)
    acts = jax.random.normal(k_act, (B, dim_action), jnp.float32)
    params = init_params(k_par, dim_observation, dim_action)
    q_ref = q_reference(obs, acts, params)

    # f32 weight path. Tolerance allows for the different MXU bf16-pass
    # decompositions XLA vs. Mosaic may pick for f32 matmuls on TPU.
    packed_f32 = pack_params(params, compute_dtype=jnp.float32)
    q32 = q_forward(obs, acts, packed_f32)
    jax.block_until_ready(q32)
    assert q32.shape == (B, 1)
    assert bool(jnp.all(jnp.isfinite(q32)))
    assert jnp.allclose(q32, q_ref, atol=2e-2, rtol=2e-2), (q32, q_ref)

    # Default bf16-weight path (recommended on v5e/v6e/v7x): f32 accumulation,
    # f32 biases/elementwise; looser tolerance for the bf16 quantization.
    packed_bf16 = pack_params(params)
    qbf = q_forward(obs, acts, packed_bf16)
    jax.block_until_ready(qbf)
    assert qbf.shape == (B, 1)
    assert bool(jnp.all(jnp.isfinite(qbf)))
    assert jnp.allclose(qbf, q_ref, atol=1e-1, rtol=1e-1), (qbf, q_ref)

    print("KERNEL_OK")
</pallas_src>

<mosaic_0001>
module attributes {stable_mosaic.version = 11 : i64} {
  func.func @q_kernel(%arg0: i32, %arg1: memref<8x16xf32, #tpu.memory_space<vmem>>, %arg2: memref<8x4xf32, #tpu.memory_space<vmem>>, %arg3: memref<16x128xf32, #tpu.memory_space<vmem>>, %arg4: memref<4x128xf32, #tpu.memory_space<vmem>>, %arg5: memref<1x128xf32, #tpu.memory_space<vmem>>, %arg6: memref<128x64xf32, #tpu.memory_space<vmem>>, %arg7: memref<1x64xf32, #tpu.memory_space<vmem>>, %arg8: memref<64x64xf32, #tpu.memory_space<vmem>>, %arg9: memref<1x64xf32, #tpu.memory_space<vmem>>, %arg10: memref<1x64xf32, #tpu.memory_space<vmem>>, %arg11: memref<1xf32, #tpu.memory_space<smem>>, %arg12: memref<8x1xf32, #tpu.memory_space<vmem>>) attributes {dimension_semantics = [#tpu.dimension_semantics<parallel>], iteration_bounds = array<i64: 1>, scalar_prefetch = 0 : i64, scratch_operands = 0 : i64, tpu.core_type = #tpu.core_type<tc>, window_params = [{transform_indices = @transform_0, window_bounds = array<i64: 8, 16>}, {transform_indices = @transform_1, window_bounds = array<i64: 8, 4>}, {pipeline_mode = #tpu.pipeline_mode<synchronous>, transform_indices = @transform_2, window_bounds = array<i64: 16, 128>}, {pipeline_mode = #tpu.pipeline_mode<synchronous>, transform_indices = @transform_3, window_bounds = array<i64: 4, 128>}, {pipeline_mode = #tpu.pipeline_mode<synchronous>, transform_indices = @transform_4, window_bounds = array<i64: 1, 128>}, {pipeline_mode = #tpu.pipeline_mode<synchronous>, transform_indices = @transform_5, window_bounds = array<i64: 128, 64>}, {pipeline_mode = #tpu.pipeline_mode<synchronous>, transform_indices = @transform_6, window_bounds = array<i64: 1, 64>}, {pipeline_mode = #tpu.pipeline_mode<synchronous>, transform_indices = @transform_7, window_bounds = array<i64: 64, 64>}, {pipeline_mode = #tpu.pipeline_mode<synchronous>, transform_indices = @transform_8, window_bounds = array<i64: 1, 64>}, {pipeline_mode = #tpu.pipeline_mode<synchronous>, transform_indices = @transform_9, window_bounds = array<i64: 1, 64>}, {transform_indices = @transform_10, window_bounds = array<i64: 1>}, {transform_indices = @transform_11, window_bounds = array<i64: 8, 1>}]} {
    %c0 = arith.constant 0 : index
    %c0_0 = arith.constant 0 : index
    %0 = vector.load %arg3[%c0, %c0_0] : memref<16x128xf32, #tpu.memory_space<vmem>>, vector<16x128xf32>
    %c0_1 = arith.constant 0 : index
    %c0_2 = arith.constant 0 : index
    %1 = vector.load %arg4[%c0_1, %c0_2] : memref<4x128xf32, #tpu.memory_space<vmem>>, vector<4x128xf32>
    %c0_3 = arith.constant 0 : index
    %c0_4 = arith.constant 0 : index
    %2 = vector.load %arg1[%c0_3, %c0_4] : memref<8x16xf32, #tpu.memory_space<vmem>>, vector<8x16xf32>
    %cst = arith.constant dense<0.000000e+00> : vector<8x128xf32>
    %3 = tpu.matmul %2, %0, %cst {dimension_numbers = #tpu.dot_dimension_numbers<[1], [0], [0], [1], [0, 0, 1, 1], [], []>} : vector<8x16xf32>, vector<16x128xf32>, vector<8x128xf32> -> vector<8x128xf32>
    %c0_5 = arith.constant 0 : index
    %c0_6 = arith.constant 0 : index
    %4 = vector.load %arg2[%c0_5, %c0_6] : memref<8x4xf32, #tpu.memory_space<vmem>>, vector<8x4xf32>
    %cst_7 = arith.constant dense<0.000000e+00> : vector<8x128xf32>
    %5 = tpu.matmul %4, %1, %cst_7 {dimension_numbers = #tpu.dot_dimension_numbers<[1], [0], [0], [1], [0, 0, 1, 1], [], []>} : vector<8x4xf32>, vector<4x128xf32>, vector<8x128xf32> -> vector<8x128xf32>
    %6 = arith.addf %3, %5 : vector<8x128xf32>
    %c0_8 = arith.constant 0 : index
    %c0_9 = arith.constant 0 : index
    %7 = vector.load %arg5[%c0_8, %c0_9] : memref<1x128xf32, #tpu.memory_space<vmem>>, vector<1x128xf32>
    %8 = vector.broadcast %7 : vector<1x128xf32> to vector<8x128xf32>
    %9 = arith.addf %6, %8 : vector<8x128xf32>
    %c0_10 = arith.constant 0 : index
    %c0_11 = arith.constant 0 : index
    %10 = vector.load %arg6[%c0_10, %c0_11] : memref<128x64xf32, #tpu.memory_space<vmem>>, vector<128x64xf32>
    %cst_12 = arith.constant dense<0.000000e+00> : vector<8x64xf32>
    %11 = tpu.matmul %9, %10, %cst_12 {dimension_numbers = #tpu.dot_dimension_numbers<[1], [0], [0], [1], [0, 0, 1, 1], [], []>} : vector<8x128xf32>, vector<128x64xf32>, vector<8x64xf32> -> vector<8x64xf32>
    %c0_13 = arith.constant 0 : index
    %c0_14 = arith.constant 0 : index
    %12 = vector.load %arg7[%c0_13, %c0_14] : memref<1x64xf32, #tpu.memory_space<vmem>>, vector<1x64xf32>
    %13 = vector.broadcast %12 : vector<1x64xf32> to vector<8x64xf32>
    %14 = arith.addf %11, %13 : vector<8x64xf32>
    %cst_15 = arith.constant 0.000000e+00 : f32
    %15 = vector.broadcast %cst_15 : f32 to vector<8x64xf32>
    %16 = arith.maximumf %14, %15 : vector<8x64xf32>
    %c0_16 = arith.constant 0 : index
    %c0_17 = arith.constant 0 : index
    %17 = vector.load %arg8[%c0_16, %c0_17] : memref<64x64xf32, #tpu.memory_space<vmem>>, vector<64x64xf32>
    %cst_18 = arith.constant dense<0.000000e+00> : vector<8x64xf32>
    %18 = tpu.matmul %16, %17, %cst_18 {dimension_numbers = #tpu.dot_dimension_numbers<[1], [0], [0], [1], [0, 0, 1, 1], [], []>} : vector<8x64xf32>, vector<64x64xf32>, vector<8x64xf32> -> vector<8x64xf32>
    %c0_19 = arith.constant 0 : index
    %c0_20 = arith.constant 0 : index
    %19 = vector.load %arg9[%c0_19, %c0_20] : memref<1x64xf32, #tpu.memory_space<vmem>>, vector<1x64xf32>
    %20 = vector.broadcast %19 : vector<1x64xf32> to vector<8x64xf32>
    %21 = arith.addf %18, %20 : vector<8x64xf32>
    %cst_21 = arith.constant 0.000000e+00 : f32
    %22 = vector.broadcast %cst_21 : f32 to vector<8x64xf32>
    %23 = arith.maximumf %21, %22 : vector<8x64xf32>
    %c0_22 = arith.constant 0 : index
    %c0_23 = arith.constant 0 : index
    %24 = vector.load %arg10[%c0_22, %c0_23] : memref<1x64xf32, #tpu.memory_space<vmem>>, vector<1x64xf32>
    %25 = vector.broadcast %24 : vector<1x64xf32> to vector<8x64xf32>
    %26 = arith.mulf %23, %25 : vector<8x64xf32>
    %cst_24 = arith.constant dense<0.000000e+00> : vector<8xf32>
    %27 = vector.multi_reduction <add>, %26, %cst_24 [1] : vector<8x64xf32> to vector<8xf32>
    %28 = vector.shape_cast %27 : vector<8xf32> to vector<8x1xf32>
    %c0_25 = arith.constant 0 : index
    %29 = memref.load %arg11[%c0_25] : memref<1xf32, #tpu.memory_space<smem>>
    %30 = vector.broadcast %29 : f32 to vector<8x1xf32>
    %31 = arith.addf %28, %30 : vector<8x1xf32>
    %c0_26 = arith.constant 0 : index
    %c0_27 = arith.constant 0 : index
    %32 = vector.load %arg12[%c0_26, %c0_27] : memref<8x1xf32, #tpu.memory_space<vmem>>, vector<8x1xf32>
    tpu.vector_store %arg12[%c0_26, %c0_27], %31 {strides = array<i32>} : memref<8x1xf32, #tpu.memory_space<vmem>>, vector<8x1xf32>,
    return
  }
  func.func @transform_0(%arg0: i32) -> (i32, i32) {
    %c0_i32 = arith.constant 0 : i32
    %c0_i32_0 = arith.constant 0 : i32
    return %arg0, %c0_i32 : i32, i32
  }
  func.func @transform_1(%arg0: i32) -> (i32, i32) {
    %c0_i32 = arith.constant 0 : i32
    %c0_i32_0 = arith.constant 0 : i32
    return %arg0, %c0_i32 : i32, i32
  }
  func.func @transform_2(%arg0: i32) -> (i32, i32) {
    %c0_i32 = arith.constant 0 : i32
    %c0_i32_0 = arith.constant 0 : i32
    %c0_i32_1 = arith.constant 0 : i32
    return %c0_i32, %c0_i32_0 : i32, i32
  }
  func.func @transform_3(%arg0: i32) -> (i32, i32) {
    %c0_i32 = arith.constant 0 : i32
    %c0_i32_0 = arith.constant 0 : i32
    %c0_i32_1 = arith.constant 0 : i32
    return %c0_i32, %c0_i32_0 : i32, i32
  }
  func.func @transform_4(%arg0: i32) -> (i32, i32) {
    %c0_i32 = arith.constant 0 : i32
    %c0_i32_0 = arith.constant 0 : i32
    %c0_i32_1 = arith.constant 0 : i32
    return %c0_i32, %c0_i32_0 : i32, i32
  }
  func.func @transform_5(%arg0: i32) -> (i32, i32) {
    %c0_i32 = arith.constant 0 : i32
    %c0_i32_0 = arith.constant 0 : i32
    %c0_i32_1 = arith.constant 0 : i32
    return %c0_i32, %c0_i32_0 : i32, i32
  }
  func.func @transform_6(%arg0: i32) -> (i32, i32) {
    %c0_i32 = arith.constant 0 : i32
    %c0_i32_0 = arith.constant 0 : i32
    %c0_i32_1 = arith.constant 0 : i32
    return %c0_i32, %c0_i32_0 : i32, i32
  }
  func.func @transform_7(%arg0: i32) -> (i32, i32) {
    %c0_i32 = arith.constant 0 : i32
    %c0_i32_0 = arith.constant 0 : i32
    %c0_i32_1 = arith.constant 0 : i32
    return %c0_i32, %c0_i32_0 : i32, i32
  }
  func.func @transform_8(%arg0: i32) -> (i32, i32) {
    %c0_i32 = arith.constant 0 : i32
    %c0_i32_0 = arith.constant 0 : i32
    %c0_i32_1 = arith.constant 0 : i32
    return %c0_i32, %c0_i32_0 : i32, i32
  }
  func.func @transform_9(%arg0: i32) -> (i32, i32) {
    %c0_i32 = arith.constant 0 : i32
    %c0_i32_0 = arith.constant 0 : i32
    %c0_i32_1 = arith.constant 0 : i32
    return %c0_i32, %c0_i32_0 : i32, i32
  }
  func.func @transform_10(%arg0: i32) -> i32 {
    %c0_i32 = arith.constant 0 : i32
    %c0_i32_0 = arith.constant 0 : i32
    return %c0_i32 : i32
  }
  func.func @transform_11(%arg0: i32) -> (i32, i32) {
    %c0_i32 = arith.constant 0 : i32
    %c0_i32_0 = arith.constant 0 : i32
    return %arg0, %c0_i32 : i32, i32
  }
}

</mosaic_0001>

<bundles_post_ra>
// kernel: q_forward.1
= control target key start
LH: loop header
LB: loop body
LE: loop exit
PB: predicated region body
PF: predicated region fallthrough
CT: control target
= control target key end

     0   :  { %vm48_vm0 = vcmask 1043456   ;;  %vm44_vm1 = vcmask 31744   ;;  %vm72_vm2 = vcmask 130048   ;;  %vm154_vm3 = vcmask 523264   ;;  %s369_s2 = inlined_call_operand.vmem [shape: f32[16,128], index: 2, kind: input, shape index: {}]   ;;  %s370_s3 = inlined_call_operand.vmem [shape: f32[4,128], index: 3, kind: input, shape index: {}]   ;;  %s371_s1 = inlined_call_operand.vmem [shape: f32[8,4], index: 1, kind: input, shape index: {}]   ;;  %s372_s0 = inlined_call_operand.vmem [shape: f32[8,16], index: 0, kind: input, shape index: {}]   ;;  %s373_s5 = inlined_call_operand.vmem [shape: f32[128,64], index: 5, kind: input, shape index: {}]   ;;  %s374_s4 = inlined_call_operand.vmem [shape: f32[1,128], index: 4, kind: input, shape index: {}]   ;;  %s375_s6 = inlined_call_operand.vmem [shape: f32[1,64], index: 6, kind: input, shape index: {}]   ;;  %s376_s7 = inlined_call_operand.vmem [shape: f32[64,64], index: 7, kind: input, shape index: {}]   ;;  %s377_s8 = inlined_call_operand.vmem [shape: f32[1,64], index: 8, kind: input, shape index: {}]   ;;  %s378_s9 = inlined_call_operand.vmem [shape: f32[1,64], index: 9, kind: input, shape index: {}]   ;;  %s379_s10 = inlined_call_operand.<no memory space> [shape: f32[1], index: 10, kind: input, shape index: {}]   ;;  %s380_s11 = inlined_call_operand.vmem [shape: f32[8,1], index: 11, kind: output, shape index: {}]  }
   0x1   :  { %v40_v0 = vld [vmem:[%s369_s2 + $0x8] sm:$0xff]  ;;  %v41_v1 = vld [vmem:[%s370_s3] sm:$0xf]  ;;  %v116_v5 = vld [vmem:[%s373_s5 + $0x78] sm:$0xff]  ;;  %v188_v45 = vstv %s379_s10  ;;  %vm190_vm4 = vcmask 7168  }
   0x2   :  { %v39_v2 = vld [vmem:[%s369_s2] sm:$0xff]  ;;  %90 = vmatpush.msra.mxu1 %v40_v0  ;;  %196 = vmatpush.msk.msra.mxu0 %vm48_vm0, %v41_v1  ;;  %v115_v6 = vld [vmem:[%s373_s5 + $0x70] sm:$0xff]  ;;  %v114_v7 = vld [vmem:[%s373_s5 + $0x68] sm:$0xff] }
   0x3   :  { %v43_v3 = vld [vmem:[%s371_s1] sm:$0xff]  ;;  %121 = vmatpush.msra.mxu2 %v116_v5  ;;  %v112_v9 = vld [vmem:[%s373_s5 + $0x58] sm:$0xff]  ;;  %v111_v10 = vld [vmem:[%s373_s5 + $0x50] sm:$0xff] }
   0x4   :  { %v42_v4 = vld [vmem:[%s372_s0] sm:$0xff]  ;;  %197 = vmatmul.msk.f32.vlgmr.msra.gmra.mxu0 %vm44_vm1, %v43_v3  ;;  %91 = vmatpush.msra.mxu1 %v39_v2  ;;  %v110_v11 = vld [vmem:[%s373_s5 + $0x48] sm:$0xff]  ;;  %v108_v13 = vld [vmem:[%s373_s5 + $0x38] sm:$0xff] }
   0x5   :  { %198 = vmatmul.msk.f32.vlgmr.msra.gmra.mxu1 %vm72_vm2, %v42_v4  ;;  %122 = vmatpush.msra.mxu2 %v115_v6  ;;  %v113_v8 = vld [vmem:[%s373_s5 + $0x60] sm:$0xff]  ;;  %v107_v14 = vld [vmem:[%s373_s5 + $0x30] sm:$0xff]  ;;  %v106_v15 = vld [vmem:[%s373_s5 + $0x28] sm:$0xff] }
   0x6   :  { %v109_v12 = vld [vmem:[%s373_s5 + $0x40] sm:$0xff]  ;;  %v104_v17 = vld [vmem:[%s373_s5 + $0x18] sm:$0xff]  ;;  %v103_v18 = vld [vmem:[%s373_s5 + $0x10] sm:$0xff] }
   0x7   :  { %123 = vmatpush.msra.mxu2 %v114_v7  ;;  %v105_v16 = vld [vmem:[%s373_s5 + $0x20] sm:$0xff]  ;;  %v102_v19 = vld [vmem:[%s373_s5 + $0x8] sm:$0xff]  ;;  %v149_v21 = vld [vmem:[%s376_s7 + $0x38] sm:$0xff] }
   0x8   :  { %v101_v20 = vld [vmem:[%s373_s5] sm:$0xff]  ;;  %v148_v22 = vld [vmem:[%s376_s7 + $0x30] sm:$0xff]  ;;  %166 = vmatpush.msra.mxu3 %v149_v21  ;;  %v147_v23 = vld [vmem:[%s376_s7 + $0x28] sm:$0xff] }
   0x9   :  { %124 = vmatpush.msra.mxu2 %v113_v8  ;;  %v146_v24 = vld [vmem:[%s376_s7 + $0x20] sm:$0xff]  ;;  %v145_v25 = vld [vmem:[%s376_s7 + $0x18] sm:$0xff]  ;;  %v144_v31 = vld [vmem:[%s376_s7 + $0x10] sm:$0xff] }
   0xa   :  { %167 = vmatpush.msra.mxu3 %v148_v22  ;;  %v200_v27 = vld [vmem:[%s374_s4] ss:$0 sm:$0xff]  ;;  %v143_v32 = vld [vmem:[%s376_s7 + $0x8] sm:$0xff] }
   0xb   :  { %125 = vmatpush.msra.mxu2 %v112_v9  ;;  %v142_v33 = vld [vmem:[%s376_s7] sm:$0xff] }
   0xc   :  { %168 = vmatpush.msra.mxu3 %v147_v23  ;;  %v201_v34 = vld [vmem:[%s375_s6] ss:$0 sm:$0xff] }
   0xd   :  { %126 = vmatpush.msra.mxu2 %v111_v10  ;;  %v202_v38 = vld [vmem:[%s377_s8] ss:$0 sm:$0xff] }
   0xe   :  { %169 = vmatpush.msra.mxu3 %v146_v24  ;;  %v203_v41 = vld [vmem:[%s378_s9] ss:$0 sm:$0xff] }
   0xf   :  { %127 = vmatpush.msra.mxu2 %v110_v11 }
  0x10   :  { %170 = vmatpush.msra.mxu3 %v145_v25 }
  0x11   :  { %128 = vmatpush.msra.mxu2 %v109_v12 }
  0x12   :  { %171 = vmatpush.msra.mxu3 %v144_v31 }
  0x13   :  { %129 = vmatpush.msra.mxu2 %v108_v13 }
  0x14   :  { %172 = vmatpush.msra.mxu3 %v143_v32 }
  0x15   :  { %130 = vmatpush.msra.mxu2 %v107_v14 }
  0x16   :  { %173 = vmatpush.msra.mxu3 %v142_v33 }
  0x17   :  { %131 = vmatpush.msra.mxu2 %v106_v15 }
  0x19   :  { %132 = vmatpush.msra.mxu2 %v105_v16 }
  0x1b   :  { %133 = vmatpush.msra.mxu2 %v104_v17 }
  0x1d   :  { %134 = vmatpush.msra.mxu2 %v103_v18 }
  0x1f   :  { %135 = vmatpush.msra.mxu2 %v102_v19 }
  0x21   :  { %136 = vmatpush.msra.mxu2 %v101_v20 }
  0x81   :  { %v69_v26 = vpop.f32.mrf.mxu0 }
  0x82   :  { %v93_v28 = vpop.f32.mrf.mxu1 }
  0x83   :  { %v94_v29 = vadd.f32 %v93_v28, %v69_v26 }
  0x85   :  { %v100_v30 = vadd.f32 %v200_v27, %v94_v29 }
  0x87   :  { %137 = vmatmul.f32.vlgmr.msra.gmra.mxu2 %v100_v30 }
 0x10a   :  { %v138_v35 = vpop.f32.mrf.mxu2 }
 0x10b   :  { %v139_v36 = vadd.f32 %v201_v34, %v138_v35 }
 0x10d   :  { %v141_v37 = vmax.f32 %v139_v36, 0.0 }
 0x10f   :  { %199 = vmatmul.msk.f32.vlgmr.msra.gmra.mxu3 %vm154_vm3, %v141_v37 }
 0x192   :  { %v175_v39 = vpop.f32.mrf.mxu3 }
 0x193   :  { %v176_v40 = vadd.f32 %v202_v38, %v175_v39 }
 0x195   :  { %v178_v42 = vmax.f32 %v176_v40, 0.0 }
 0x197   :  { %v183_v43 = vmul.f32 %v203_v41, %v178_v42 }
 0x199   :  { %v184_v44 = vsel %vm154_vm3, %v183_v43, 0.0 }
 0x19a   :  { %185 = vadd.xlane.f32.xlu0 %v184_v44 }
 0x20d   :  { %v186_v46 = vpop.xlane.xlu0 %185 }
 0x20e   :  { %v189_v47 = vadd.f32 %v188_v45, %v186_v46 }
 0x210   :  { %191 = vst.msk [vmem:[%s380_s11] sm:$0xff] %vm190_vm4, %v189_v47 }

</bundles_post_ra>
